<compile_context>
chip_gen: v5e
topology: v5e:2x2
jax: 0.10.0
libtpu: 0.0.40
codegen_flags: <defaults>
</compile_context>

<pallas_src>
import functools

import jax
import jax.numpy as jnp
from jax.experimental import pallas as pl
from jax.experimental.pallas import tpu as pltpu


LANE = 128      # TPU lane width; N is padded to a lane-dense multiple of this.
BATCH_TILE = 8  # sublane-dense batch tile per grid step (must be a multiple of 8).


def _fused_action_kernel(stim_ref, args_ref, m_ref, c_ref, ws_ref, c0_ref,
                         x_ref, logp_ref, *, n_valid):
    """One batch tile (TB rows) per grid step.

    Fused math (wrapper precomputes M, c, ws, c0 from Wk/bk/Wq/bq):
        K = stim @ Wk^T + bk ;  Q[n] = args[n] @ Wq^T + bq
        x[b,n] = K[b] . Q[b,n] = args[b,n] . (stim[b] @ M + c) + (stim[b] . ws + c0)
    """
    stim = stim_ref[...]                       # (TB, H)
    cand = args_ref[...]                       # (TB, N_pad, H)

    # t = stim @ M + c : (TB, H)   -- one MXU matmul for the whole batch tile
    t = jnp.dot(stim, m_ref[...], preferred_element_type=jnp.float32) + c_ref[...]
    # s = stim . ws + c0 : (TB, 1) -- tiny VPU multiply + XLU lane reduce
    s = jnp.sum(stim * ws_ref[...], axis=-1, keepdims=True) + c0_ref[...]

    # logits[b, n] = t[b] . cand[b, n]  -- batched MXU contraction over H
    # (same 3-D einsum pattern as the flash-attention reference kernel).
    t3 = t[:, None, :]                         # (TB, 1, H)
    logits3 = jnp.einsum("bqh,bnh->bqn", t3, cand,
                         preferred_element_type=jnp.float32)   # (TB, 1, N_pad)
    logits = logits3[:, 0, :] + s              # (TB, N_pad)
    x = jnp.maximum(logits, 0.0)               # DotReluBlock relu
    x_ref[...] = x                             # sublane- & lane-dense store

    # Fused classify() epilogue: log(1e-3 + softmax(x)) over the real N lanes.
    # Padded lanes are excluded from the softmax; the wrapper slices them away.
    lane = jax.lax.broadcasted_iota(jnp.int32, x.shape, 1)
    valid = lane < n_valid
    xm = jnp.where(valid, x, -1e30)
    mx = jnp.max(xm, axis=-1, keepdims=True)
    e = jnp.where(valid, jnp.exp(xm - mx), 0.0)
    denom = jnp.sum(e, axis=-1, keepdims=True)
    # log(1e-3 + e/denom) = log(1e-3*denom + e) - log(denom)
    logp_ref[...] = jnp.log(1e-3 * denom + e) - jnp.log(denom)


def _forward_pallas(stim, args, fused, *, batch_tile=BATCH_TILE):
    """Runs the kernel; returns (x, log(1e-3 + softmax(x))) with shape (B, N)."""
    B, N, H = args.shape
    assert stim.shape == (B, H)
    assert batch_tile % 8 == 0, "batch tile must be sublane-dense (multiple of 8)"

    n_pad = ((N + LANE - 1) // LANE) * LANE
    b_pad = ((B + batch_tile - 1) // batch_tile) * batch_tile
    # Wrapper-side padding/reshape: free layout plumbing, keeps kernel blocks
    # (8,128)-friendly and all stores unmasked.
    if n_pad != N or b_pad != B:
        args = jnp.pad(args, ((0, b_pad - B), (0, n_pad - N), (0, 0)))
    if b_pad != B:
        stim = jnp.pad(stim, ((0, b_pad - B), (0, 0)))

    kernel = functools.partial(_fused_action_kernel, n_valid=N)
    x_pad, logp_pad = pl.pallas_call(
        kernel,
        out_shape=(jax.ShapeDtypeStruct((b_pad, n_pad), jnp.float32),
                   jax.ShapeDtypeStruct((b_pad, n_pad), jnp.float32)),
        grid=(b_pad // batch_tile,),
        in_specs=[
            pl.BlockSpec((batch_tile, H), lambda b: (b, 0)),          # stim tile
            pl.BlockSpec((batch_tile, n_pad, H), lambda b: (b, 0, 0)),  # candidate args
            pl.BlockSpec((H, H), lambda b: (0, 0)),                   # M  (grid-invariant)
            pl.BlockSpec((1, H), lambda b: (0, 0)),                   # c
            pl.BlockSpec((1, H), lambda b: (0, 0)),                   # ws
            pl.BlockSpec((1, 1), lambda b: (0, 0)),                   # c0
        ],
        out_specs=(pl.BlockSpec((batch_tile, n_pad), lambda b: (b, 0)),
                   pl.BlockSpec((batch_tile, n_pad), lambda b: (b, 0))),
        compiler_params=pltpu.CompilerParams(
            dimension_semantics=("parallel",)),
    )(stim, args, fused["M"], fused["c"], fused["ws"], fused["c0"])

    return x_pad[:B, :N], logp_pad[:B, :N]


def variable_discrete_action(stim, args, lens, fused, sample_key):
    """Forward pass of VariableDiscreteAction. `lens` is unused (matches reference)."""
    del lens
    x, logp = _forward_pallas(stim, args, fused)
    # TODO(synk): torch.distributions.Categorical sampling is not bit-reproducible;
    # we sample the identical distribution via jax.random.categorical on the
    # in-kernel log-probs (could be further fused as in-kernel Gumbel-max with
    # pltpu.prng_seed / pltpu.prng_random_bits).
    xIdx = jax.random.categorical(sample_key, logp, axis=1)
    return x, xIdx


def fuse_params(params):
    """Fold the two nn.Linear layers (once per weight update). Exact up to fp rounding."""
    wk_t, bk = params["wk_t"], params["bk"]
    wq_t, bq = params["wq_t"], params["bq"]
    hp = jax.lax.Precision.HIGHEST
    return {
        "M":  jnp.dot(wk_t, wq_t.T, precision=hp),   # (H, H)
        "c":  jnp.dot(bk, wq_t.T, precision=hp),     # (1, H)
        "ws": jnp.dot(bq, wk_t.T, precision=hp),     # (1, H)
        "c0": jnp.dot(bk, bq.T, precision=hp),       # (1, 1)
    }


def _reference(stim, args, params):
    """Pure-JAX reference for the un-fused in-kernel math (logits only)."""
    hp = jax.lax.Precision.HIGHEST
    k = jnp.dot(stim, params["wk_t"], precision=hp) + params["bk"]
    q = jnp.einsum("bnh,hk->bnk", args, params["wq_t"], precision=hp) + params["bq"]
    return jnp.maximum(jnp.sum(k[:, None, :] * q, axis=-1), 0.0)


def init_params(key, h):
    """Deterministic synthetic init matching nn.Linear(h, h) shapes.

    Torch stores weight as (h_out, h_in); we generate the transposed (h_in, h_out)
    layout directly so math is x @ W + b.
    """
    kk, kb, qk, qb = jax.random.split(key, 4)
    bound = 1.0 / jnp.sqrt(h)
    return {
        "wk_t": jax.random.uniform(kk, (h, h), jnp.float32, -bound, bound),
        "bk":   jax.random.uniform(kb, (1, h), jnp.float32, -bound, bound),
        "wq_t": jax.random.uniform(qk, (h, h), jnp.float32, -bound, bound),
        "bq":   jax.random.uniform(qb, (1, h), jnp.float32, -bound, bound),
    }


if __name__ == "__main__":
    B, N, H = 2, 8, 32   # batch, num candidate actions, hidden

    root = jax.random.PRNGKey(0)
    k_stim, k_args, k_params, k_sample = jax.random.split(root, 4)

    stim = jax.random.normal(k_stim, (B, H), jnp.float32)      # agent hidden state
    args = jax.random.normal(k_args, (B, N, H), jnp.float32)   # candidate action embeddings
    lens = jnp.array([N, N - 3], dtype=jnp.int32)               # unused (mask commented out upstream)
    params = init_params(k_params, H)
    fused = fuse_params(params)                                 # once per weight update

    x, xIdx = variable_discrete_action(stim, args, lens, fused, k_sample)
    jax.block_until_ready((x, xIdx))

    # Sanity checks vs. the un-fused pure-JAX reference. Tolerances absorb MXU
    # default-precision rounding differences between fused/un-fused orderings.
    x_ref = _reference(stim, args, params)
    assert x.shape == (B, N) and xIdx.shape == (B,)
    assert jnp.allclose(x, x_ref, atol=2e-2, rtol=2e-2), "kernel x mismatch vs reference"

    _, logp = _forward_pallas(stim, args, fused)
    logp_ref = jnp.log(1e-3 + jax.nn.softmax(x_ref, axis=1))
    assert logp.shape == (B, N)
    assert jnp.allclose(logp, logp_ref, atol=5e-2, rtol=5e-2), "kernel logp mismatch vs reference"

    print("KERNEL_OK")
</pallas_src>

<mosaic_0001>
module attributes {stable_mosaic.version = 11 : i64} {
  func.func @_fused_action_kernel(%arg0: i32, %arg1: memref<8x32xf32, #tpu.memory_space<vmem>>, %arg2: memref<8x128x32xf32, #tpu.memory_space<vmem>>, %arg3: memref<32x32xf32, #tpu.memory_space<vmem>>, %arg4: memref<1x32xf32, #tpu.memory_space<vmem>>, %arg5: memref<1x32xf32, #tpu.memory_space<vmem>>, %arg6: memref<1x1xf32, #tpu.memory_space<vmem>>, %arg7: memref<8x128xf32, #tpu.memory_space<vmem>>, %arg8: memref<8x128xf32, #tpu.memory_space<vmem>>) attributes {dimension_semantics = [#tpu.dimension_semantics<parallel>], iteration_bounds = array<i64: 1>, scalar_prefetch = 0 : i64, scratch_operands = 0 : i64, tpu.core_type = #tpu.core_type<tc>, window_params = [{transform_indices = @transform_0, window_bounds = array<i64: 8, 32>}, {transform_indices = @transform_1, window_bounds = array<i64: 8, 128, 32>}, {pipeline_mode = #tpu.pipeline_mode<synchronous>, transform_indices = @transform_2, window_bounds = array<i64: 32, 32>}, {pipeline_mode = #tpu.pipeline_mode<synchronous>, transform_indices = @transform_3, window_bounds = array<i64: 1, 32>}, {pipeline_mode = #tpu.pipeline_mode<synchronous>, transform_indices = @transform_4, window_bounds = array<i64: 1, 32>}, {pipeline_mode = #tpu.pipeline_mode<synchronous>, transform_indices = @transform_5, window_bounds = array<i64: 1, 1>}, {transform_indices = @transform_6, window_bounds = array<i64: 8, 128>}, {transform_indices = @transform_7, window_bounds = array<i64: 8, 128>}]} {
    %c0 = arith.constant 0 : index
    %c0_0 = arith.constant 0 : index
    %0 = vector.load %arg1[%c0, %c0_0] : memref<8x32xf32, #tpu.memory_space<vmem>>, vector<8x32xf32>
    %c0_1 = arith.constant 0 : index
    %c0_2 = arith.constant 0 : index
    %c0_3 = arith.constant 0 : index
    %1 = vector.load %arg2[%c0_1, %c0_2, %c0_3] : memref<8x128x32xf32, #tpu.memory_space<vmem>>, vector<8x128x32xf32>
    %c0_4 = arith.constant 0 : index
    %c0_5 = arith.constant 0 : index
    %2 = vector.load %arg3[%c0_4, %c0_5] : memref<32x32xf32, #tpu.memory_space<vmem>>, vector<32x32xf32>
    %cst = arith.constant dense<0.000000e+00> : vector<8x32xf32>
    %3 = tpu.matmul %0, %2, %cst {dimension_numbers = #tpu.dot_dimension_numbers<[1], [0], [0], [1], [0, 0, 1, 1], [], []>} : vector<8x32xf32>, vector<32x32xf32>, vector<8x32xf32> -> vector<8x32xf32>
    %c0_6 = arith.constant 0 : index
    %c0_7 = arith.constant 0 : index
    %4 = vector.load %arg4[%c0_6, %c0_7] : memref<1x32xf32, #tpu.memory_space<vmem>>, vector<1x32xf32>
    %5 = vector.broadcast %4 : vector<1x32xf32> to vector<8x32xf32>
    %6 = arith.addf %3, %5 : vector<8x32xf32>
    %c0_8 = arith.constant 0 : index
    %c0_9 = arith.constant 0 : index
    %7 = vector.load %arg5[%c0_8, %c0_9] : memref<1x32xf32, #tpu.memory_space<vmem>>, vector<1x32xf32>
    %8 = vector.broadcast %7 : vector<1x32xf32> to vector<8x32xf32>
    %9 = arith.mulf %0, %8 : vector<8x32xf32>
    %cst_10 = arith.constant dense<0.000000e+00> : vector<8xf32>
    %10 = vector.multi_reduction <add>, %9, %cst_10 [1] : vector<8x32xf32> to vector<8xf32>
    %11 = vector.shape_cast %10 : vector<8xf32> to vector<8x1xf32>
    %c0_11 = arith.constant 0 : index
    %c0_12 = arith.constant 0 : index
    %12 = vector.load %arg6[%c0_11, %c0_12] : memref<1x1xf32, #tpu.memory_space<vmem>>, vector<1x1xf32>
    %13 = vector.broadcast %12 : vector<1x1xf32> to vector<8x1xf32>
    %14 = arith.addf %11, %13 : vector<8x1xf32>
    %15 = vector.shape_cast %6 : vector<8x32xf32> to vector<8x1x32xf32>
    "tpu.trace_start"() <{level = 10 : i32, message = "bqh,bnh->bqn"}> : () -> ()
    %cst_13 = arith.constant dense<0.000000e+00> : vector<8x1x128xf32>
    %16 = tpu.matmul %15, %1, %cst_13 {dimension_numbers = #tpu.dot_dimension_numbers<[2], [2], [1], [1], [0, 0, 0, 1, 1, 1], [0], [0]>} : vector<8x1x32xf32>, vector<8x128x32xf32>, vector<8x1x128xf32> -> vector<8x1x128xf32>
    "tpu.trace_stop"() : () -> ()
    %17 = vector.shape_cast %16 : vector<8x1x128xf32> to vector<8x128xf32>
    %18 = vector.broadcast %14 : vector<8x1xf32> to vector<8x128xf32>
    %19 = arith.addf %17, %18 : vector<8x128xf32>
    %cst_14 = arith.constant 0.000000e+00 : f32
    %20 = vector.broadcast %cst_14 : f32 to vector<8x128xf32>
    %21 = arith.maximumf %19, %20 : vector<8x128xf32>
    %c0_15 = arith.constant 0 : index
    %c0_16 = arith.constant 0 : index
    %22 = vector.load %arg7[%c0_15, %c0_16] : memref<8x128xf32, #tpu.memory_space<vmem>>, vector<8x128xf32>
    tpu.vector_store %arg7[%c0_15, %c0_16], %21 {strides = array<i32>} : memref<8x128xf32, #tpu.memory_space<vmem>>, vector<8x128xf32>,
    %23 = tpu.iota {dimensions = array<i32: 1>} : vector<8x128xi32>
    %c8_i32 = arith.constant 8 : i32
    %24 = vector.broadcast %c8_i32 : i32 to vector<8x128xi32>
    %25 = arith.cmpi slt, %23, %24 : vector<8x128xi32>
    %cst_17 = arith.constant -1.000000e+30 : f32
    %26 = vector.broadcast %cst_17 : f32 to vector<8x128xf32>
    %27 = arith.select %25, %21, %26 : vector<8x128xi1>, vector<8x128xf32>
    %cst_18 = arith.constant dense<0xFF800000> : vector<8xf32>
    %28 = vector.multi_reduction <maximumf>, %27, %cst_18 [1] : vector<8x128xf32> to vector<8xf32>
    %29 = vector.shape_cast %28 : vector<8xf32> to vector<8x1xf32>
    %30 = vector.broadcast %29 : vector<8x1xf32> to vector<8x128xf32>
    %31 = arith.subf %27, %30 : vector<8x128xf32>
    %32 = math.exp %31 : vector<8x128xf32>
    %cst_19 = arith.constant 0.000000e+00 : f32
    %33 = vector.broadcast %cst_19 : f32 to vector<8x128xf32>
    %34 = arith.select %25, %32, %33 : vector<8x128xi1>, vector<8x128xf32>
    %cst_20 = arith.constant dense<0.000000e+00> : vector<8xf32>
    %35 = vector.multi_reduction <add>, %34, %cst_20 [1] : vector<8x128xf32> to vector<8xf32>
    %36 = vector.shape_cast %35 : vector<8xf32> to vector<8x1xf32>
    %cst_21 = arith.constant 1.000000e-03 : f32
    %37 = vector.broadcast %cst_21 : f32 to vector<8x1xf32>
    %38 = arith.mulf %37, %36 : vector<8x1xf32>
    %39 = vector.broadcast %38 : vector<8x1xf32> to vector<8x128xf32>
    %40 = arith.addf %39, %34 : vector<8x128xf32>
    %41 = math.log %40 : vector<8x128xf32>
    %42 = math.log %36 : vector<8x1xf32>
    %43 = vector.broadcast %42 : vector<8x1xf32> to vector<8x128xf32>
    %44 = arith.subf %41, %43 : vector<8x128xf32>
    %c0_22 = arith.constant 0 : index
    %c0_23 = arith.constant 0 : index
    %45 = vector.load %arg8[%c0_22, %c0_23] : memref<8x128xf32, #tpu.memory_space<vmem>>, vector<8x128xf32>
    tpu.vector_store %arg8[%c0_22, %c0_23], %44 {strides = array<i32>} : memref<8x128xf32, #tpu.memory_space<vmem>>, vector<8x128xf32>,
    return
  }
  func.func @transform_0(%arg0: i32) -> (i32, i32) {
    %c0_i32 = arith.constant 0 : i32
    %c0_i32_0 = arith.constant 0 : i32
    return %arg0, %c0_i32 : i32, i32
  }
  func.func @transform_1(%arg0: i32) -> (i32, i32, i32) {
    %c0_i32 = arith.constant 0 : i32
    %c0_i32_0 = arith.constant 0 : i32
    %c0_i32_1 = arith.constant 0 : i32
    return %arg0, %c0_i32, %c0_i32_0 : i32, i32, i32
  }
  func.func @transform_2(%arg0: i32) -> (i32, i32) {
    %c0_i32 = arith.constant 0 : i32
    %c0_i32_0 = arith.constant 0 : i32
    %c0_i32_1 = arith.constant 0 : i32
    return %c0_i32, %c0_i32_0 : i32, i32
  }
  func.func @transform_3(%arg0: i32) -> (i32, i32) {
    %c0_i32 = arith.constant 0 : i32
    %c0_i32_0 = arith.constant 0 : i32
    %c0_i32_1 = arith.constant 0 : i32
    return %c0_i32, %c0_i32_0 : i32, i32
  }
  func.func @transform_4(%arg0: i32) -> (i32, i32) {
    %c0_i32 = arith.constant 0 : i32
    %c0_i32_0 = arith.constant 0 : i32
    %c0_i32_1 = arith.constant 0 : i32
    return %c0_i32, %c0_i32_0 : i32, i32
  }
  func.func @transform_5(%arg0: i32) -> (i32, i32) {
    %c0_i32 = arith.constant 0 : i32
    %c0_i32_0 = arith.constant 0 : i32
    %c0_i32_1 = arith.constant 0 : i32
    return %c0_i32, %c0_i32_0 : i32, i32
  }
  func.func @transform_6(%arg0: i32) -> (i32, i32) {
    %c0_i32 = arith.constant 0 : i32
    %c0_i32_0 = arith.constant 0 : i32
    return %arg0, %c0_i32 : i32, i32
  }
  func.func @transform_7(%arg0: i32) -> (i32, i32) {
    %c0_i32 = arith.constant 0 : i32
    %c0_i32_0 = arith.constant 0 : i32
    return %arg0, %c0_i32 : i32, i32
  }
}

</mosaic_0001>

<bundles_post_ra>
// kernel: tpu_custom_call.1
= control target key start
LH: loop header
LB: loop body
LE: loop exit
PB: predicated region body
PF: predicated region fallthrough
CT: control target
= control target key end

     0   :  { %s1686_s0 = inlined_call_operand.vmem [shape: f32[8,32], index: 0, kind: input, shape index: {}]   ;;  %s1687_s1 = inlined_call_operand.vmem [shape: f32[8,128,32], index: 1, kind: input, shape index: {}]   ;;  %s1688_s2 = inlined_call_operand.vmem [shape: f32[32,32], index: 2, kind: input, shape index: {}]   ;;  %s1689_s3 = inlined_call_operand.vmem [shape: f32[1,32], index: 3, kind: input, shape index: {}]   ;;  %s1690_s4 = inlined_call_operand.vmem [shape: f32[1,32], index: 4, kind: input, shape index: {}]   ;;  %s1691_s5 = inlined_call_operand.<no memory space> [shape: f32[1,1], index: 5, kind: input, shape index: {}]   ;;  %s1692_s6 = inlined_call_operand.hbm [shape: f32[8,128], index: 6, kind: output, shape index: {0}]   ;;  %s1693_s7 = inlined_call_operand.hbm [shape: f32[8,128], index: 7, kind: output, shape index: {1}]  }
   0x1   :  { %v13_v0 = vstv %s1691_s5 }
   0x2   :  { %14 = vst [vmem:[#allocation2] sm:$0x1] %v13_v0 }
   0x3   :  { %15 = vsyncpa [#allocation4], 0  ;;  %v161_v1 = vld [vmem:[%s1688_s2 + $0x18] sm:$0xff]  ;;  %v160_v2 = vld [vmem:[%s1688_s2 + $0x10] sm:$0xff]  ;;  %vm166_vm0 = vcmask 261120  }
   0x4   :  { %182 = vmatpush.msra.mxu0 %v161_v1  ;;  %v45_v3 = vld [vmem:[%s1687_s1 + $0x78] sm:$0xff]  ;;  %v159_v4 = vld [vmem:[%s1688_s2 + $0x8] sm:$0xff]  ;;  %v44_v7 = vld [vmem:[%s1687_s1 + $0x70] sm:$0xff] }
   0x5   :  { %890 = vmatpush.xpose.msk.msra.mxu1 %vm166_vm0, %v45_v3  ;;  %v61_v5 = vld [vmem:[%s1687_s1 + $0xf8] sm:$0xff]  ;;  %v158_v8 = vld [vmem:[%s1688_s2] sm:$0xff]  ;;  %v60_v9 = vld [vmem:[%s1687_s1 + $0xf0] sm:$0xff] }
   0x6   :  { %v77_v6 = vld [vmem:[%s1687_s1 + $0x178] sm:$0xff]  ;;  %183 = vmatpush.msra.mxu0 %v160_v2  ;;  %907 = vmatpush.xpose.msk.msra.mxu2 %vm166_vm0, %v61_v5  ;;  %v29_v10 = vld [vmem:[%s1686_s0] sm:$0xff]  ;;  %v76_v11 = vld [vmem:[%s1687_s1 + $0x170] sm:$0xff] }
   0x7   :  { %924 = vmatpush.xpose.msk.msra.mxu3 %vm166_vm0, %v77_v6  ;;  %v1030_v12 = vld [vmem:[%s1690_s4] ss:$0 sm:$0xff]  ;;  %v93_v13 = vld [vmem:[%s1687_s1 + $0x1f8] sm:$0xff]  ;;  %v43_v14 = vld [vmem:[%s1687_s1 + $0x68] sm:$0xff] }
   0x8   :  { %184 = vmatpush.msra.mxu0 %v159_v4  ;;  %v194_v15 = vmul.f32 %v1030_v12, %v29_v10  ;;  %v59_v16 = vld [vmem:[%s1687_s1 + $0xe8] sm:$0xff]  ;;  %v92_v19 = vld [vmem:[%s1687_s1 + $0x1f0] sm:$0xff]  ;;  %v42_v20 = vld [vmem:[%s1687_s1 + $0x60] sm:$0xff] }
   0x9   :  { %891 = vmatpush.xpose.msk.msra.mxu1 %vm166_vm0, %v44_v7  ;;  %v75_v18 = vld [vmem:[%s1687_s1 + $0x168] sm:$0xff]  ;;  %v58_v21 = vld [vmem:[%s1687_s1 + $0xe0] sm:$0xff]  ;;  %v41_v24 = vld [vmem:[%s1687_s1 + $0x58] sm:$0xff] }
   0xa   :  { %185 = vmatpush.msra.mxu0 %v158_v8  ;;  %908 = vmatpush.xpose.msk.msra.mxu2 %vm166_vm0, %v60_v9  ;;  %v195_v17 = vsel %vm166_vm0, %v194_v15, 0.0  ;;  %v74_v22 = vld [vmem:[%s1687_s1 + $0x160] sm:$0xff]  ;;  %v91_v23 = vld [vmem:[%s1687_s1 + $0x1e8] sm:$0xff]  ;;  %v57_v25 = vld [vmem:[%s1687_s1 + $0xd8] sm:$0xff] }
   0xb   :  { %889 = vmatmul.msk.f32.vlgmr.msra.gmra.mxu0 %vm166_vm0, %v29_v10  ;;  %925 = vmatpush.xpose.msk.msra.mxu3 %vm166_vm0, %v76_v11  ;;  %v73_v26 = vld [vmem:[%s1687_s1 + $0x158] sm:$0xff]  ;;  %v90_v27 = vld [vmem:[%s1687_s1 + $0x1e0] sm:$0xff]  ;;  %v40_v28 = vld [vmem:[%s1687_s1 + $0x50] sm:$0xff] }
   0xc   :  { %941 = vmatpush.xpose.msk.msrb.mxu0 %vm166_vm0, %v93_v13  ;;  %196 = vadd.xlane.f32.xlu0 %v195_v17 }
   0xd   :  { %892 = vmatpush.xpose.msk.msra.mxu1 %vm166_vm0, %v43_v14 }
   0xe   :  { %909 = vmatpush.xpose.msk.msra.mxu2 %vm166_vm0, %v59_v16 }
   0xf   :  { %926 = vmatpush.xpose.msk.msra.mxu3 %vm166_vm0, %v75_v18 }
  0x10   :  { %942 = vmatpush.xpose.msk.msrb.mxu0 %vm166_vm0, %v92_v19 }
  0x11   :  { %893 = vmatpush.xpose.msk.msra.mxu1 %vm166_vm0, %v42_v20 }
  0x12   :  { %910 = vmatpush.xpose.msk.msra.mxu2 %vm166_vm0, %v58_v21 }
  0x13   :  { %927 = vmatpush.xpose.msk.msra.mxu3 %vm166_vm0, %v74_v22 }
  0x14   :  { %943 = vmatpush.xpose.msk.msrb.mxu0 %vm166_vm0, %v91_v23 }
  0x15   :  { %894 = vmatpush.xpose.msk.msra.mxu1 %vm166_vm0, %v41_v24 }
  0x16   :  { %911 = vmatpush.xpose.msk.msra.mxu2 %vm166_vm0, %v57_v25 }
  0x17   :  { %16 = vsyncpa [#allocation6], 0  ;;  %928 = vmatpush.xpose.msk.msra.mxu3 %vm166_vm0, %v73_v26  ;;  %v56_v29 = vld [vmem:[%s1687_s1 + $0xd0] sm:$0xff]  ;;  %v89_v31 = vld [vmem:[%s1687_s1 + $0x1d8] sm:$0xff]  ;;  %vm815_vm1 = vcmask 1041409   ;;  %vm818_vm2 = vcmask 1042434  }
  0x18   :  { %944 = vmatpush.xpose.msk.msrb.mxu0 %vm166_vm0, %v90_v27  ;;  %v72_v30 = vld [vmem:[%s1687_s1 + $0x150] sm:$0xff]  ;;  %v39_v32 = vld [vmem:[%s1687_s1 + $0x48] sm:$0xff]  ;;  %v38_v36 = vld [vmem:[%s1687_s1 + $0x40] sm:$0xff]  ;;  %vm821_vm3 = vcmask 1043459   ;;  %vm824_vm4 = vcmask 1044484   ;;  %vm827_vm5 = vcmask 1045509  }
  0x19   :  { %895 = vmatpush.xpose.msk.msra.mxu1 %vm166_vm0, %v40_v28  ;;  %v55_v33 = vld [vmem:[%s1687_s1 + $0xc8] sm:$0xff]  ;;  %v88_v35 = vld [vmem:[%s1687_s1 + $0x1d0] sm:$0xff]  ;;  %v54_v37 = vld [vmem:[%s1687_s1 + $0xc0] sm:$0xff]  ;;  %vm830_vm6 = vcmask 1046534   ;;  %vm833_vm7 = vcmask 1047559   ;;  %s864_s28 = sshll.u32 %s1692_s6, 4  ;;  %s865_s28 = int_to_ptr.hbm [resolvable:$true] %s864_s28 }
  0x1a   :  { %912 = vmatpush.xpose.msk.msra.mxu2 %vm166_vm0, %v56_v29  ;;  %v71_v34 = vld [vmem:[%s1687_s1 + $0x148] sm:$0xff]  ;;  %v70_v38 = vld [vmem:[%s1687_s1 + $0x140] sm:$0xff]  ;;  %v37_v40 = vld [vmem:[%s1687_s1 + $0x38] sm:$0xff]  ;;  %s1092_s0 = smov [#allocation3]   ;;  %s1093_s29 = smov [#allocation5]  }
  0x1b   :  { %929 = vmatpush.xpose.msk.msra.mxu3 %vm166_vm0, %v72_v30  ;;  %v87_v39 = vld [vmem:[%s1687_s1 + $0x1c8] sm:$0xff]  ;;  %v53_v41 = vld [vmem:[%s1687_s1 + $0xb8] sm:$0xff]  ;;  %v86_v43 = vld [vmem:[%s1687_s1 + $0x1c0] sm:$0xff]  ;;  %s862_s4 = sshll.u32 %s1092_s0, 4  ;;  %s873_s30 = sshll.u32 %s1093_s29, 4  ;;  %s863_s4 = int_to_ptr.vmem [resolvable:$true] %s862_s4  ;;  %s874_s30 = int_to_ptr.vmem [resolvable:$true] %s873_s30 }
  0x1c   :  { %945 = vmatpush.xpose.msk.msrb.mxu0 %vm166_vm0, %v89_v31  ;;  %v69_v42 = vld [vmem:[%s1687_s1 + $0x138] sm:$0xff]  ;;  %v36_v44 = vld [vmem:[%s1687_s1 + $0x30] sm:$0xff]  ;;  %v35_v48 = vld [vmem:[%s1687_s1 + $0x28] sm:$0xff]  ;;  %s875_s10 = sshll.u32 %s1693_s7, 4  ;;  %s876_s10 = int_to_ptr.hbm [resolvable:$true] %s875_s10 }
  0x1d   :  { %896 = vmatpush.xpose.msk.msra.mxu1 %vm166_vm0, %v39_v32  ;;  %v52_v45 = vld [vmem:[%s1687_s1 + $0xb0] sm:$0xff]  ;;  %v85_v47 = vld [vmem:[%s1687_s1 + $0x1b8] sm:$0xff]  ;;  %v51_v49 = vld [vmem:[%s1687_s1 + $0xa8] sm:$0xff] }
  0x1e   :  { %913 = vmatpush.xpose.msk.msra.mxu2 %vm166_vm0, %v55_v33  ;;  %v68_v46 = vld [vmem:[%s1687_s1 + $0x130] sm:$0xff]  ;;  %v67_v50 = vld [vmem:[%s1687_s1 + $0x128] sm:$0xff]  ;;  %v34_v52 = vld [vmem:[%s1687_s1 + $0x20] sm:$0xff] }
  0x1f   :  { %930 = vmatpush.xpose.msk.msra.mxu3 %vm166_vm0, %v71_v34  ;;  %v84_v51 = vld [vmem:[%s1687_s1 + $0x1b0] sm:$0xff]  ;;  %v50_v53 = vld [vmem:[%s1687_s1 + $0xa0] sm:$0xff]  ;;  %v83_v55 = vld [vmem:[%s1687_s1 + $0x1a8] sm:$0xff] }
  0x20   :  { %946 = vmatpush.xpose.msk.msrb.mxu0 %vm166_vm0, %v88_v35  ;;  %v66_v54 = vld [vmem:[%s1687_s1 + $0x120] sm:$0xff]  ;;  %v33_v56 = vld [vmem:[%s1687_s1 + $0x18] sm:$0xff]  ;;  %v32_v60 = vld [vmem:[%s1687_s1 + $0x10] sm:$0xff] }
  0x21   :  { %897 = vmatpush.xpose.msk.msra.mxu1 %vm166_vm0, %v38_v36  ;;  %v49_v57 = vld [vmem:[%s1687_s1 + $0x98] sm:$0xff]  ;;  %v82_v59 = vld [vmem:[%s1687_s1 + $0x1a0] sm:$0xff]  ;;  %v48_v61 = vld [vmem:[%s1687_s1 + $0x90] sm:$0xff] }
  0x22   :  { %914 = vmatpush.xpose.msk.msra.mxu2 %vm166_vm0, %v54_v37  ;;  %v65_v58 = vld [vmem:[%s1687_s1 + $0x118] sm:$0xff]  ;;  %v64_v62 = vld [vmem:[%s1687_s1 + $0x110] sm:$0xff]  ;;  %v31_v0 = vld [vmem:[%s1687_s1 + $0x8] sm:$0xff] }
  0x23   :  { %931 = vmatpush.xpose.msk.msra.mxu3 %vm166_vm0, %v70_v38  ;;  %v81_v63 = vld [vmem:[%s1687_s1 + $0x198] sm:$0xff]  ;;  %v47_v1 = vld [vmem:[%s1687_s1 + $0x88] sm:$0xff]  ;;  %v80_v3 = vld [vmem:[%s1687_s1 + $0x190] sm:$0xff] }
  0x24   :  { %947 = vmatpush.xpose.msk.msrb.mxu0 %vm166_vm0, %v87_v39  ;;  %v63_v2 = vld [vmem:[%s1687_s1 + $0x108] sm:$0xff]  ;;  %v30_v4 = vld [vmem:[%s1687_s1] sm:$0xff]  ;;  %v109_v5 = vld [vmem:[%s1687_s1 + $0x278] sm:$0xff] }
  0x25   :  { %898 = vmatpush.xpose.msk.msra.mxu1 %vm166_vm0, %v37_v40  ;;  %v46_v6 = vld [vmem:[%s1687_s1 + $0x80] sm:$0xff]  ;;  %v125_v8 = vld [vmem:[%s1687_s1 + $0x2f8] sm:$0xff]  ;;  %v79_v9 = vld [vmem:[%s1687_s1 + $0x188] sm:$0xff] }
  0x26   :  { %915 = vmatpush.xpose.msk.msra.mxu2 %vm166_vm0, %v53_v41  ;;  %v62_v7 = vld [vmem:[%s1687_s1 + $0x100] sm:$0xff]  ;;  %v141_v10 = vld [vmem:[%s1687_s1 + $0x378] sm:$0xff]  ;;  %v108_v11 = vld [vmem:[%s1687_s1 + $0x270] sm:$0xff] }
  0x27   :  { %932 = vmatpush.xpose.msk.msra.mxu3 %vm166_vm0, %v69_v42  ;;  %v124_v12 = vld [vmem:[%s1687_s1 + $0x2f0] sm:$0xff]  ;;  %v78_v13 = vld [vmem:[%s1687_s1 + $0x180] sm:$0xff]  ;;  %v157_v15 = vld [vmem:[%s1687_s1 + $0x3f8] sm:$0xff] }
  0x28   :  { %948 = vmatpush.xpose.msk.msrb.mxu0 %vm166_vm0, %v86_v43  ;;  %v140_v14 = vld [vmem:[%s1687_s1 + $0x370] sm:$0xff]  ;;  %v107_v16 = vld [vmem:[%s1687_s1 + $0x268] sm:$0xff]  ;;  %v106_v20 = vld [vmem:[%s1687_s1 + $0x260] sm:$0xff] }
  0x29   :  { %899 = vmatpush.xpose.msk.msra.mxu1 %vm166_vm0, %v36_v44  ;;  %v123_v17 = vld [vmem:[%s1687_s1 + $0x2e8] sm:$0xff]  ;;  %v156_v19 = vld [vmem:[%s1687_s1 + $0x3f0] sm:$0xff]  ;;  %v122_v21 = vld [vmem:[%s1687_s1 + $0x2e0] sm:$0xff] }
  0x2a   :  { %916 = vmatpush.xpose.msk.msra.mxu2 %vm166_vm0, %v52_v45  ;;  %v139_v18 = vld [vmem:[%s1687_s1 + $0x368] sm:$0xff]  ;;  %v138_v22 = vld [vmem:[%s1687_s1 + $0x360] sm:$0xff]  ;;  %v105_v24 = vld [vmem:[%s1687_s1 + $0x258] sm:$0xff] }
  0x2b   :  { %933 = vmatpush.xpose.msk.msra.mxu3 %vm166_vm0, %v68_v46  ;;  %v155_v23 = vld [vmem:[%s1687_s1 + $0x3e8] sm:$0xff]  ;;  %v121_v25 = vld [vmem:[%s1687_s1 + $0x2d8] sm:$0xff]  ;;  %v154_v27 = vld [vmem:[%s1687_s1 + $0x3e0] sm:$0xff] }
  0x2c   :  { %949 = vmatpush.xpose.msk.msrb.mxu0 %vm166_vm0, %v85_v47  ;;  %v137_v26 = vld [vmem:[%s1687_s1 + $0x358] sm:$0xff]  ;;  %v104_v28 = vld [vmem:[%s1687_s1 + $0x250] sm:$0xff]  ;;  %v103_v32 = vld [vmem:[%s1687_s1 + $0x248] sm:$0xff] }
  0x2d   :  { %900 = vmatpush.xpose.msk.msra.mxu1 %vm166_vm0, %v35_v48  ;;  %v120_v29 = vld [vmem:[%s1687_s1 + $0x2d0] sm:$0xff]  ;;  %v153_v31 = vld [vmem:[%s1687_s1 + $0x3d8] sm:$0xff]  ;;  %v119_v33 = vld [vmem:[%s1687_s1 + $0x2c8] sm:$0xff] }
  0x2e   :  { %917 = vmatpush.xpose.msk.msra.mxu2 %vm166_vm0, %v51_v49  ;;  %v136_v30 = vld [vmem:[%s1687_s1 + $0x350] sm:$0xff]  ;;  %v135_v34 = vld [vmem:[%s1687_s1 + $0x348] sm:$0xff]  ;;  %v102_v36 = vld [vmem:[%s1687_s1 + $0x240] sm:$0xff] }
  0x2f   :  { %934 = vmatpush.xpose.msk.msra.mxu3 %vm166_vm0, %v67_v50  ;;  %v152_v35 = vld [vmem:[%s1687_s1 + $0x3d0] sm:$0xff]  ;;  %v118_v37 = vld [vmem:[%s1687_s1 + $0x2c0] sm:$0xff]  ;;  %v151_v39 = vld [vmem:[%s1687_s1 + $0x3c8] sm:$0xff] }
  0x30   :  { %950 = vmatpush.xpose.msk.msrb.mxu0 %vm166_vm0, %v84_v51  ;;  %v134_v38 = vld [vmem:[%s1687_s1 + $0x340] sm:$0xff]  ;;  %v101_v40 = vld [vmem:[%s1687_s1 + $0x238] sm:$0xff]  ;;  %v100_v44 = vld [vmem:[%s1687_s1 + $0x230] sm:$0xff] }
  0x31   :  { %901 = vmatpush.xpose.msk.msra.mxu1 %vm166_vm0, %v34_v52  ;;  %v117_v41 = vld [vmem:[%s1687_s1 + $0x2b8] sm:$0xff]  ;;  %v150_v43 = vld [vmem:[%s1687_s1 + $0x3c0] sm:$0xff]  ;;  %v116_v45 = vld [vmem:[%s1687_s1 + $0x2b0] sm:$0xff] }
  0x32   :  { %918 = vmatpush.xpose.msk.msra.mxu2 %vm166_vm0, %v50_v53  ;;  %v133_v42 = vld [vmem:[%s1687_s1 + $0x338] sm:$0xff]  ;;  %v132_v46 = vld [vmem:[%s1687_s1 + $0x330] sm:$0xff]  ;;  %v99_v48 = vld [vmem:[%s1687_s1 + $0x228] sm:$0xff] }
  0x33   :  { %935 = vmatpush.xpose.msk.msra.mxu3 %vm166_vm0, %v66_v54  ;;  %v149_v47 = vld [vmem:[%s1687_s1 + $0x3b8] sm:$0xff]  ;;  %v115_v49 = vld [vmem:[%s1687_s1 + $0x2a8] sm:$0xff]  ;;  %v148_v51 = vld [vmem:[%s1687_s1 + $0x3b0] sm:$0xff] }
  0x34   :  { %951 = vmatpush.xpose.msk.msrb.mxu0 %vm166_vm0, %v83_v55  ;;  %v131_v50 = vld [vmem:[%s1687_s1 + $0x328] sm:$0xff]  ;;  %v98_v52 = vld [vmem:[%s1687_s1 + $0x220] sm:$0xff] }
  0x35   :  { %902 = vmatpush.xpose.msk.msra.mxu1 %vm166_vm0, %v33_v56  ;;  %v114_v53 = vld [vmem:[%s1687_s1 + $0x2a0] sm:$0xff]  ;;  %v147_v55 = vld [vmem:[%s1687_s1 + $0x3a8] sm:$0xff]  ;;  %v97_v56 = vld [vmem:[%s1687_s1 + $0x218] sm:$0xff] }
  0x36   :  { %919 = vmatpush.xpose.msk.msra.mxu2 %vm166_vm0, %v49_v57  ;;  %v130_v54 = vld [vmem:[%s1687_s1 + $0x320] sm:$0xff]  ;;  %v113_v57 = vld [vmem:[%s1687_s1 + $0x298] sm:$0xff] }
  0x37   :  { %936 = vmatpush.xpose.msk.msra.mxu3 %vm166_vm0, %v65_v58  ;;  %v129_v58 = vld [vmem:[%s1687_s1 + $0x318] sm:$0xff] }
  0x38   :  { %952 = vmatpush.xpose.msk.msrb.mxu0 %vm166_vm0, %v82_v59  ;;  %v146_v59 = vld [vmem:[%s1687_s1 + $0x3a0] sm:$0xff] }
  0x39   :  { %903 = vmatpush.xpose.msk.msra.mxu1 %vm166_vm0, %v32_v60  ;;  %v96_v60 = vld [vmem:[%s1687_s1 + $0x210] sm:$0xff] }
  0x3a   :  { %920 = vmatpush.xpose.msk.msra.mxu2 %vm166_vm0, %v48_v61  ;;  %v112_v61 = vld [vmem:[%s1687_s1 + $0x290] sm:$0xff] }
  0x3b   :  { %937 = vmatpush.xpose.msk.msra.mxu3 %vm166_vm0, %v64_v62  ;;  %v1091_v62 = vmov 0  }
  0x3c   :  { %953 = vmatpush.xpose.msk.msrb.mxu0 %vm166_vm0, %v81_v63  ;;  %1029 = vset.pattern.permute.xlu0 %v1091_v62  ;;  %v128_v63 = vld [vmem:[%s1687_s1 + $0x310] sm:$0xff] }
  0x3d   :  { %904 = vmatpush.xpose.msk.msra.mxu1 %vm166_vm0, %v31_v0  ;;  %v145_v0 = vld [vmem:[%s1687_s1 + $0x398] sm:$0xff] }
  0x3e   :  { %921 = vmatpush.xpose.msk.msra.mxu2 %vm166_vm0, %v47_v1  ;;  %v95_v1 = vld [vmem:[%s1687_s1 + $0x208] sm:$0xff] }
  0x3f   :  { %938 = vmatpush.xpose.msk.msra.mxu3 %vm166_vm0, %v63_v2  ;;  %v111_v2 = vld [vmem:[%s1687_s1 + $0x288] sm:$0xff] }
  0x40   :  { %954 = vmatpush.xpose.msk.msrb.mxu0 %vm166_vm0, %v80_v3  ;;  %v127_v3 = vld [vmem:[%s1687_s1 + $0x308] sm:$0xff] }
  0x41   :  { %905 = vmatpush.xpose.msk.msra.mxu1 %vm166_vm0, %v30_v4  ;;  %v144_v4 = vld [vmem:[%s1687_s1 + $0x390] sm:$0xff] }
  0x42   :  { %922 = vmatpush.xpose.msk.msra.mxu2 %vm166_vm0, %v46_v6  ;;  %v110_v6 = vld [vmem:[%s1687_s1 + $0x280] sm:$0xff] }
  0x43   :  { %939 = vmatpush.xpose.msk.msra.mxu3 %vm166_vm0, %v62_v7  ;;  %v126_v7 = vld [vmem:[%s1687_s1 + $0x300] sm:$0xff] }
  0x44   :  { %955 = vmatpush.xpose.msk.msrb.mxu0 %vm166_vm0, %v79_v9  ;;  %v143_v9 = vld [vmem:[%s1687_s1 + $0x388] sm:$0xff] }
  0x45   :  { %958 = vmatpush.xpose.msk.msrb.mxu1 %vm166_vm0, %v109_v5  ;;  %v94_v5 = vld [vmem:[%s1687_s1 + $0x200] sm:$0xff] }
  0x46   :  { %975 = vmatpush.xpose.msk.msrb.mxu2 %vm166_vm0, %v125_v8  ;;  %v1032_v8 = vld [vmem:[#allocation2] ss:$0 sm:$0xff] }
  0x47   :  { %992 = vmatpush.xpose.msk.msrb.mxu3 %vm166_vm0, %v141_v10 }
  0x48   :  { %956 = vmatpush.xpose.msk.msrb.mxu0 %vm166_vm0, %v78_v13  ;;  %v1031_v13 = vld [vmem:[%s1689_s3] ss:$0 sm:$0xff] }
  0x49   :  { %959 = vmatpush.xpose.msk.msrb.mxu1 %vm166_vm0, %v108_v11 }
  0x4a   :  { %976 = vmatpush.xpose.msk.msrb.mxu2 %vm166_vm0, %v124_v12  ;;  %v142_v12 = vld [vmem:[%s1687_s1 + $0x380] sm:$0xff] }
  0x4b   :  { %993 = vmatpush.xpose.msk.msrb.mxu3 %vm166_vm0, %v140_v14 }
  0x4c   :  { %1009 = vmatpush.xpose.msk.msra.mxu0 %vm166_vm0, %v157_v15 }
  0x4d   :  { %960 = vmatpush.xpose.msk.msrb.mxu1 %vm166_vm0, %v107_v16 }
  0x4e   :  { %977 = vmatpush.xpose.msk.msrb.mxu2 %vm166_vm0, %v123_v17 }
  0x4f   :  { %994 = vmatpush.xpose.msk.msrb.mxu3 %vm166_vm0, %v139_v18 }
  0x50   :  { %1010 = vmatpush.xpose.msk.msra.mxu0 %vm166_vm0, %v156_v19 }
  0x51   :  { %961 = vmatpush.xpose.msk.msrb.mxu1 %vm166_vm0, %v106_v20 }
  0x52   :  { %978 = vmatpush.xpose.msk.msrb.mxu2 %vm166_vm0, %v122_v21 }
  0x53   :  { %995 = vmatpush.xpose.msk.msrb.mxu3 %vm166_vm0, %v138_v22 }
  0x54   :  { %1011 = vmatpush.xpose.msk.msra.mxu0 %vm166_vm0, %v155_v23 }
  0x55   :  { %962 = vmatpush.xpose.msk.msrb.mxu1 %vm166_vm0, %v105_v24 }
  0x56   :  { %979 = vmatpush.xpose.msk.msrb.mxu2 %vm166_vm0, %v121_v25 }
  0x57   :  { %996 = vmatpush.xpose.msk.msrb.mxu3 %vm166_vm0, %v137_v26 }
  0x58   :  { %1012 = vmatpush.xpose.msk.msra.mxu0 %vm166_vm0, %v154_v27 }
  0x59   :  { %963 = vmatpush.xpose.msk.msrb.mxu1 %vm166_vm0, %v104_v28 }
  0x5a   :  { %980 = vmatpush.xpose.msk.msrb.mxu2 %vm166_vm0, %v120_v29 }
  0x5b   :  { %997 = vmatpush.xpose.msk.msrb.mxu3 %vm166_vm0, %v136_v30 }
  0x5c   :  { %1013 = vmatpush.xpose.msk.msra.mxu0 %vm166_vm0, %v153_v31 }
  0x5d   :  { %964 = vmatpush.xpose.msk.msrb.mxu1 %vm166_vm0, %v103_v32 }
  0x5e   :  { %981 = vmatpush.xpose.msk.msrb.mxu2 %vm166_vm0, %v119_v33 }
  0x5f   :  { %998 = vmatpush.xpose.msk.msrb.mxu3 %vm166_vm0, %v135_v34 }
  0x60   :  { %1014 = vmatpush.xpose.msk.msra.mxu0 %vm166_vm0, %v152_v35 }
  0x61   :  { %965 = vmatpush.xpose.msk.msrb.mxu1 %vm166_vm0, %v102_v36 }
  0x62   :  { %982 = vmatpush.xpose.msk.msrb.mxu2 %vm166_vm0, %v118_v37 }
  0x63   :  { %999 = vmatpush.xpose.msk.msrb.mxu3 %vm166_vm0, %v134_v38 }
  0x64   :  { %1015 = vmatpush.xpose.msk.msra.mxu0 %vm166_vm0, %v151_v39 }
  0x65   :  { %966 = vmatpush.xpose.msk.msrb.mxu1 %vm166_vm0, %v101_v40 }
  0x66   :  { %983 = vmatpush.xpose.msk.msrb.mxu2 %vm166_vm0, %v117_v41 }
  0x67   :  { %1000 = vmatpush.xpose.msk.msrb.mxu3 %vm166_vm0, %v133_v42 }
  0x68   :  { %1016 = vmatpush.xpose.msk.msra.mxu0 %vm166_vm0, %v150_v43 }
  0x69   :  { %967 = vmatpush.xpose.msk.msrb.mxu1 %vm166_vm0, %v100_v44 }
  0x6a   :  { %984 = vmatpush.xpose.msk.msrb.mxu2 %vm166_vm0, %v116_v45 }
  0x6b   :  { %1001 = vmatpush.xpose.msk.msrb.mxu3 %vm166_vm0, %v132_v46  ;;  %v837_v46 = vlaneseq }
  0x6c   :  { %1017 = vmatpush.xpose.msk.msra.mxu0 %vm166_vm0, %v149_v47 }
  0x6d   :  { %968 = vmatpush.xpose.msk.msrb.mxu1 %vm166_vm0, %v99_v48 }
  0x6e   :  { %985 = vmatpush.xpose.msk.msrb.mxu2 %vm166_vm0, %v115_v49 }
  0x6f   :  { %1002 = vmatpush.xpose.msk.msrb.mxu3 %vm166_vm0, %v131_v50 }
  0x70   :  { %1018 = vmatpush.xpose.msk.msra.mxu0 %vm166_vm0, %v148_v51 }
  0x71   :  { %969 = vmatpush.xpose.msk.msrb.mxu1 %vm166_vm0, %v98_v52 }
  0x72   :  { %986 = vmatpush.xpose.msk.msrb.mxu2 %vm166_vm0, %v114_v53 }
  0x73   :  { %1003 = vmatpush.xpose.msk.msrb.mxu3 %vm166_vm0, %v130_v54 }
  0x74   :  { %1019 = vmatpush.xpose.msk.msra.mxu0 %vm166_vm0, %v147_v55 }
  0x75   :  { %970 = vmatpush.xpose.msk.msrb.mxu1 %vm166_vm0, %v97_v56 }
  0x76   :  { %987 = vmatpush.xpose.msk.msrb.mxu2 %vm166_vm0, %v113_v57 }
  0x77   :  { %1004 = vmatpush.xpose.msk.msrb.mxu3 %vm166_vm0, %v129_v58  ;;  %v838_v58 = vand.u32 127, %v837_v46 }
  0x78   :  { %1020 = vmatpush.xpose.msk.msra.mxu0 %vm166_vm0, %v146_v59 }
  0x79   :  { %971 = vmatpush.xpose.msk.msrb.mxu1 %vm166_vm0, %v96_v60  ;;  %vm839_vm8 = vcmp.lt.s32.totalorder %v838_v58, 8 }
  0x7a   :  { %988 = vmatpush.xpose.msk.msrb.mxu2 %vm166_vm0, %v112_v61 }
  0x7b   :  { %1005 = vmatpush.xpose.msk.msrb.mxu3 %vm166_vm0, %v128_v63 }
  0x7c   :  { %1021 = vmatpush.xpose.msk.msra.mxu0 %vm166_vm0, %v145_v0 }
  0x7d   :  { %972 = vmatpush.xpose.msk.msrb.mxu1 %vm166_vm0, %v95_v1 }
  0x7e   :  { %989 = vmatpush.xpose.msk.msrb.mxu2 %vm166_vm0, %v111_v2 }
  0x7f   :  { %1006 = vmatpush.xpose.msk.msrb.mxu3 %vm166_vm0, %v127_v3  ;;  %v197_v10 = vpop.xlane.xlu0 %196 }
  0x80   :  { %1022 = vmatpush.xpose.msk.msra.mxu0 %vm166_vm0, %v144_v4  ;;  %v202_v11 = vadd.f32 %v1032_v8, %v197_v10 }
  0x81   :  { %973 = vmatpush.xpose.msk.msrb.mxu1 %vm166_vm0, %v94_v5 }
  0x82   :  { %990 = vmatpush.xpose.msk.msrb.mxu2 %vm166_vm0, %v110_v6  ;;  %773 = vperm.xlu0 %1029, %v202_v11  }
  0x83   :  { %1007 = vmatpush.xpose.msk.msrb.mxu3 %vm166_vm0, %v126_v7 }
  0x84   :  { %1023 = vmatpush.xpose.msk.msra.mxu0 %vm166_vm0, %v143_v9 }
  0x88   :  { %1024 = vmatpush.xpose.msk.msra.mxu0 %vm166_vm0, %v142_v12  ;;  %v187_v14 = vpop.f32.mrf.mxu0 }
  0x89   :  { %v188_v15 = vadd.f32 %v1031_v13, %v187_v14 }
  0x8b   :  { %906 = vmatmul.msk.f32.vlgmr.msra.gmra.mxu1 %vm166_vm0, %v188_v15  ;;  %v204_v16 = vrot.slane %v188_v15, 1  ;;  %v205_v17 = vrot.slane %v188_v15, 2  ;;  %v206_v18 = vrot.slane %v188_v15, 3  ;;  %v207_v19 = vrot.slane %v188_v15, 4 }
  0x8c   :  { %v208_v20 = vrot.slane %v188_v15, 5  ;;  %v209_v21 = vrot.slane %v188_v15, 6  ;;  %v210_v22 = vrot.slane %v188_v15, 7 }
  0x8d   :  { %923 = vmatmul.msk.f32.vlgmr.msra.gmra.mxu2 %vm166_vm0, %v204_v16  ;;  %940 = vmatmul.msk.f32.vlgmr.msra.gmra.mxu3 %vm166_vm0, %v205_v17 }
  0x8e   :  { %957 = vmatmul.msk.f32.vlgmr.msrb.gmra.mxu0 %vm166_vm0, %v206_v18 }
  0x93   :  { %974 = vmatmul.msk.f32.vlgmr.msrb.gmra.mxu1 %vm166_vm0, %v207_v19 }
  0x95   :  { %991 = vmatmul.msk.f32.vlgmr.msrb.gmra.mxu2 %vm166_vm0, %v208_v20  ;;  %1008 = vmatmul.msk.f32.vlgmr.msrb.gmra.mxu3 %vm166_vm0, %v209_v21 }
  0x96   :  { %1025 = vmatmul.msk.f32.vlgmr.msra.gmra.mxu0 %vm166_vm0, %v210_v22 }
  0xf4   :  { %v774_v24 = vpop.permute.xlu0 %773 }
  0xf5   :  { %v777_v26 = vrot.slane %v774_v24, 3  ;;  %v775_v27 = vrot.slane %v774_v24, 1  ;;  %v776_v28 = vrot.slane %v774_v24, 2  ;;  %v778_v31 = vrot.slane %v774_v24, 4 }
  0xf6   :  { %v781_v39 = vrot.slane %v774_v24, 7  ;;  %v779_v49 = vrot.slane %v774_v24, 5  ;;  %v780_v50 = vrot.slane %v774_v24, 6 }
 0x108   :  { %v278_v23 = vpop.f32.mrf.mxu1 }
 0x109   :  { %v790_v32 = vadd.f32 %v774_v24, %v278_v23 }
 0x10b   :  { %v488_v25 = vpop.f32.mrf.mxu0  ;;  %v798_v42 = vmax.f32 %v790_v32, 0.0 }
 0x10c   :  { %v793_v33 = vadd.f32 %v777_v26, %v488_v25 }
 0x10e   :  { %v801_v43 = vmax.f32 %v793_v33, 0.0 }
 0x110   :  { %v348_v29 = vpop.f32.mrf.mxu2  ;;  %v418_v30 = vpop.f32.mrf.mxu3  ;;  %v820_v55 = vrot.slane %v801_v43, 5 }
 0x111   :  { %v791_v34 = vadd.f32 %v775_v27, %v348_v29  ;;  %v792_v35 = vadd.f32 %v776_v28, %v418_v30  ;;  %v558_v36 = vpop.f32.mrf.mxu1 }
 0x112   :  { %v794_v40 = vadd.f32 %v778_v31, %v558_v36 }
 0x113   :  { %v799_v37 = vmax.f32 %v791_v34, 0.0  ;;  %v800_v38 = vmax.f32 %v792_v35, 0.0  ;;  %v768_v41 = vpop.f32.mrf.mxu0 }
 0x114   :  { %v797_v48 = vadd.f32 %v781_v39, %v768_v41  ;;  %v802_v52 = vmax.f32 %v794_v40, 0.0 }
 0x115   :  { %v814_v44 = vrot.slane %v799_v37, 7  ;;  %v817_v45 = vrot.slane %v800_v38, 6 }
 0x116   :  { %v805_v60 = vmax.f32 %v797_v48, 0.0  ;;  %v823_v63 = vrot.slane %v802_v52, 4 }
 0x117   :  { %v816_v47 = vsel %vm815_vm1, %v814_v44, %v798_v42 }
 0x118   :  { %v819_v51 = vsel %vm818_vm2, %v817_v45, %v816_v47  ;;  %v628_v53 = vpop.f32.mrf.mxu2  ;;  %v698_v54 = vpop.f32.mrf.mxu3  ;;  %v832_v3 = vrot.slane %v805_v60, 1 }
 0x119   :  { %v795_v56 = vadd.f32 %v779_v49, %v628_v53  ;;  %v796_v57 = vadd.f32 %v780_v50, %v698_v54  ;;  %v822_v59 = vsel %vm821_vm3, %v820_v55, %v819_v51 }
 0x11a   :  { %v825_v2 = vsel %vm824_vm4, %v823_v63, %v822_v59 }
 0x11b   :  { %v803_v61 = vmax.f32 %v795_v56, 0.0  ;;  %v804_v62 = vmax.f32 %v796_v57, 0.0 }
 0x11d   :  { %v826_v0 = vrot.slane %v803_v61, 3  ;;  %v829_v1 = vrot.slane %v804_v62, 2 }
 0x11f   :  { %v828_v4 = vsel %vm827_vm5, %v826_v0, %v825_v2 }
 0x120   :  { %v831_v5 = vsel %vm830_vm6, %v829_v1, %v828_v4 }
 0x121   :  { %v834_v6 = vsel %vm833_vm7, %v832_v3, %v831_v5 }
 0x122   :  { %v840_v7 = vsel %vm839_vm8, %v834_v6, -1e+30  ;;  %836 = vst [vmem:[#allocation3] sm:$0xff] %v834_v6 }
 0x123   :  { %841 = vmax.xlane.f32.xlu1 %v840_v7  ;;  %867 = dma.vmem_to_hbm [thread:$0]  %s863_s4, 128, %s865_s28, [#allocation4]  }
 0x196   :  { %v842_v8 = vpop.xlane.xlu1 %841 }
 0x197   :  { %v843_v9 = vsub.f32 %v840_v7, %v842_v8 }
 0x199   :  { %v844_v10 = vmul.f32 1.442695, %v843_v9 }
 0x19b   :  { %1033 = vpow2.f32 %v844_v10 }
 0x1a1   :  { %v1034_v11 = vpop.eup %1033 }
 0x1a2   :  { %v846_v12 = vsel %vm839_vm8, %v1034_v11, 0.0 }
 0x1a3   :  { %847 = vadd.xlane.f32.xlu1 %v846_v12 }
 0x216   :  { %v848_v13 = vpop.xlane.xlu1 %847 }
 0x217   :  { %v849_v14 = vmul.f32 0.001, %v848_v13  ;;  %1035 = vlog2.f32 %v848_v13 }
 0x219   :  { %v850_v15 = vadd.f32 %v849_v14, %v846_v12 }
 0x21b   :  { %1037 = vlog2.f32 %v850_v15 }
 0x21d   :  { %v1036_v16 = vpop.eup %1035 }
 0x21e   :  { %v854_v19 = vmul.f32 0.6931472, %v1036_v16 }
 0x221   :  { %v1038_v17 = vpop.eup %1037 }
 0x222   :  { %v852_v18 = vmul.f32 0.6931472, %v1038_v17 }
 0x224   :  { %v855_v20 = vsub.f32 %v852_v18, %v854_v19 }
 0x226   :  { %856 = vst [vmem:[#allocation5] sm:$0xff] %v855_v20 }
 0x227   :  { %878 = dma.vmem_to_hbm [thread:$0]  %s874_s30, 128, %s876_s10, [#allocation6]  }
 0x228   :  { %1087 = dma.done.wait [#allocation4], 128  }
 0x229   :  { %1088 = vsyncadd [#allocation4], 4294967168 }
 0x22a   :  { %1089 = dma.done.wait [#allocation6], 128  }
 0x22b   :  { %1090 = vsyncadd [#allocation6], 4294967168 }
 0x22c   :  { %887 = vsyncpa [#allocation4], 1 }
 0x22d   :  { %888 = vsyncpa [#allocation6], 1 }

</bundles_post_ra>
